<compile_context>
chip_gen: v7x
topology: tpu7x:2x2x1
jax: 0.10.0
libtpu: 0.0.40
codegen_flags: <defaults>
</compile_context>

<pallas_src>
import math

import jax
import jax.numpy as jnp
from jax.experimental import pallas as pl
from jax.experimental.pallas import tpu as pltpu

_LOG_2PI = math.log(2.0 * math.pi)


def _normal_logpdf_kernel(x_ref, mu_ref, lv_ref, o_ref):
    # x_ref: (R, C) samples ; mu_ref / lv_ref: (R, 1) per-row mean / logvar.
    x = x_ref[...]                       # (R, C) f32
    mu = mu_ref[...]                     # (R, 1) f32
    lv = lv_ref[...]                     # (R, 1) f32

    # One EUP exp per row instead of a (R, C)-wide divide by exp(logvar).
    inv_var = jnp.exp(-lv)               # (R, 1)

    diff = x - mu                        # lane-broadcast of (R, 1)
    o_ref[...] = (-0.5) * (lv + _LOG_2PI + diff * diff * inv_var)


def _pad_to_tile(n, base, max_tile):
    """Return (padded_size, tile) with tile | padded_size, tile % base == 0."""
    n_base = -(-n // base) * base
    if n_base <= max_tile:
        return n_base, n_base
    n_pad = -(-n_base // max_tile) * max_tile
    return n_pad, max_tile


def normal_distribution(sample, params):
    """Pallas TPU implementation of NormalDistribution.forward.

    sample: (B, N, T) float array.
    params: (B, N, 2) float array; [..., 0] = mean, [..., 1] = log variance.
    Returns the elementwise Normal log-density, shape (B, N, T), float32.
    """
    assert sample.ndim == 3, sample.shape
    assert params.ndim == 3 and params.shape[2] == 2, params.shape
    B, N, T = sample.shape
    assert params.shape[:2] == (B, N), (params.shape, sample.shape)
    M = B * N

    # Flatten (B, N) onto the sublane axis; sequence T stays on the lane axis.
    x = sample.reshape(M, T).astype(jnp.float32)
    mu = params[:, :, 0].reshape(M, 1).astype(jnp.float32)
    lv = params[:, :, 1].reshape(M, 1).astype(jnp.float32)

    # Pad to sublane/lane-dense tiles (unmasked vld/vst inside the kernel).
    Mp, row_tile = _pad_to_tile(M, 8, 256)
    Tp, col_tile = _pad_to_tile(T, 128, 512)

    if Mp != M:
        x = jnp.pad(x, ((0, Mp - M), (0, 0)))
        mu = jnp.pad(mu, ((0, Mp - M), (0, 0)))
        lv = jnp.pad(lv, ((0, Mp - M), (0, 0)))   # logvar pad 0 -> exp(0)=1, safe
    if Tp != T:
        x = jnp.pad(x, ((0, 0), (0, Tp - T)))

    grid = (Mp // row_tile, Tp // col_tile)

    out = pl.pallas_call(
        _normal_logpdf_kernel,
        out_shape=jax.ShapeDtypeStruct((Mp, Tp), jnp.float32),
        grid=grid,
        in_specs=[
            pl.BlockSpec((row_tile, col_tile), lambda i, j: (i, j)),
            pl.BlockSpec((row_tile, 1), lambda i, j: (i, 0)),
            pl.BlockSpec((row_tile, 1), lambda i, j: (i, 0)),
        ],
        out_specs=pl.BlockSpec((row_tile, col_tile), lambda i, j: (i, j)),
        compiler_params=pltpu.CompilerParams(
            dimension_semantics=("parallel", "parallel")),
        cost_estimate=pl.CostEstimate(
            flops=6 * Mp * Tp,
            transcendentals=Mp,
            bytes_accessed=4 * (2 * Mp * Tp + 2 * Mp)),
    )(x, mu, lv)

    return out[:M, :T].reshape(B, N, T)


def _reference(sample, params):
    # Pure-JAX reference mirroring the PyTorch forward exactly.
    mu = params[:, :, 0][..., None].astype(jnp.float32)
    lv = params[:, :, 1][..., None].astype(jnp.float32)
    return -0.5 * (lv + _LOG_2PI
                   + jnp.square(sample.astype(jnp.float32) - mu) / jnp.exp(lv))


if __name__ == "__main__":
    key = jax.random.PRNGKey(0)
    k_sample, k_params = jax.random.split(key)

    B, N, T = 2, 4, 16
    sample = jax.random.normal(k_sample, (B, N, T), dtype=jnp.float32)
    params = jax.random.normal(k_params, (B, N, 2), dtype=jnp.float32)

    out = normal_distribution(sample, params)
    out = jax.block_until_ready(out)

    ref = _reference(sample, params)
    assert out.shape == (B, N, T), out.shape
    assert jnp.allclose(out, ref, atol=1e-5, rtol=1e-5), (out, ref)

    print("KERNEL_OK")
</pallas_src>

<mosaic_0001>
module attributes {stable_mosaic.version = 11 : i64} {
  func.func @_normal_logpdf_kernel(%arg0: i32, %arg1: i32, %arg2: memref<8x128xf32, #tpu.memory_space<vmem>>, %arg3: memref<8x1xf32, #tpu.memory_space<vmem>>, %arg4: memref<8x1xf32, #tpu.memory_space<vmem>>, %arg5: memref<8x128xf32, #tpu.memory_space<vmem>>) attributes {dimension_semantics = [#tpu.dimension_semantics<parallel>, #tpu.dimension_semantics<parallel>], iteration_bounds = array<i64: 1, 1>, scalar_prefetch = 0 : i64, scratch_operands = 0 : i64, tpu.core_type = #tpu.core_type<tc>, window_params = [{transform_indices = @transform_0, window_bounds = array<i64: 8, 128>}, {transform_indices = @transform_1, window_bounds = array<i64: 8, 1>}, {transform_indices = @transform_2, window_bounds = array<i64: 8, 1>}, {transform_indices = @transform_3, window_bounds = array<i64: 8, 128>}]} {
    %c0 = arith.constant 0 : index
    %c0_0 = arith.constant 0 : index
    %0 = vector.load %arg2[%c0, %c0_0] : memref<8x128xf32, #tpu.memory_space<vmem>>, vector<8x128xf32>
    %c0_1 = arith.constant 0 : index
    %c0_2 = arith.constant 0 : index
    %1 = vector.load %arg3[%c0_1, %c0_2] : memref<8x1xf32, #tpu.memory_space<vmem>>, vector<8x1xf32>
    %c0_3 = arith.constant 0 : index
    %c0_4 = arith.constant 0 : index
    %2 = vector.load %arg4[%c0_3, %c0_4] : memref<8x1xf32, #tpu.memory_space<vmem>>, vector<8x1xf32>
    %cst = arith.constant 0.000000e+00 : f32
    %3 = vector.broadcast %cst : f32 to vector<8x1xf32>
    %4 = arith.subf %3, %2 : vector<8x1xf32>
    %5 = math.exp %4 : vector<8x1xf32>
    %6 = vector.broadcast %1 : vector<8x1xf32> to vector<8x128xf32>
    %7 = arith.subf %0, %6 : vector<8x128xf32>
    %cst_5 = arith.constant 1.83787704 : f32
    %8 = vector.broadcast %cst_5 : f32 to vector<8x1xf32>
    %9 = arith.addf %2, %8 : vector<8x1xf32>
    %10 = arith.mulf %7, %7 : vector<8x128xf32>
    %11 = vector.broadcast %5 : vector<8x1xf32> to vector<8x128xf32>
    %12 = arith.mulf %10, %11 : vector<8x128xf32>
    %13 = vector.broadcast %9 : vector<8x1xf32> to vector<8x128xf32>
    %14 = arith.addf %13, %12 : vector<8x128xf32>
    %cst_6 = arith.constant -5.000000e-01 : f32
    %15 = vector.broadcast %cst_6 : f32 to vector<8x128xf32>
    %16 = arith.mulf %15, %14 : vector<8x128xf32>
    %c0_7 = arith.constant 0 : index
    %c0_8 = arith.constant 0 : index
    %17 = vector.load %arg5[%c0_7, %c0_8] : memref<8x128xf32, #tpu.memory_space<vmem>>, vector<8x128xf32>
    tpu.vector_store %arg5[%c0_7, %c0_8], %16 {strides = array<i32>} : memref<8x128xf32, #tpu.memory_space<vmem>>, vector<8x128xf32>,
    return
  }
  func.func @transform_0(%arg0: i32, %arg1: i32) -> (i32, i32) {
    %c0_i32 = arith.constant 0 : i32
    return %arg0, %arg1 : i32, i32
  }
  func.func @transform_1(%arg0: i32, %arg1: i32) -> (i32, i32) {
    %c0_i32 = arith.constant 0 : i32
    %c0_i32_0 = arith.constant 0 : i32
    return %arg0, %c0_i32 : i32, i32
  }
  func.func @transform_2(%arg0: i32, %arg1: i32) -> (i32, i32) {
    %c0_i32 = arith.constant 0 : i32
    %c0_i32_0 = arith.constant 0 : i32
    return %arg0, %c0_i32 : i32, i32
  }
  func.func @transform_3(%arg0: i32, %arg1: i32) -> (i32, i32) {
    %c0_i32 = arith.constant 0 : i32
    return %arg0, %arg1 : i32, i32
  }
}

</mosaic_0001>

<bundles_post_ra>
// kernel: tpu_custom_call.1
= control target key start
LH: loop header
LB: loop body
LE: loop exit
PB: predicated region body
PF: predicated region fallthrough
CT: control target
= control target key end

     0   :  { %s130_s0 = inlined_call_operand.vmem [shape: f32[8,128], index: 0, kind: input, shape index: {}]   ;;  %s131_s1 = inlined_call_operand.vmem [shape: f32[8,1], index: 1, kind: input, shape index: {}]   ;;  %s132_s2 = inlined_call_operand.vmem [shape: f32[8,1], index: 2, kind: input, shape index: {}]   ;;  %s133_s3 = inlined_call_operand.hbm [shape: f32[8,128], index: 3, kind: output, shape index: {}]  }
   0x1   :  { %v16_v0 = vld [vmem:[%s131_s1] sm:$0xff] }
   0x2   :  { %v17_v1 = vld [vmem:[%s132_s2] sm:$0xff] }
   0x3   :  { %8 = vsyncpa [#allocation3], 0  ;;  %v87_v2 = vmov 0   ;;  %v18_v3 = vsub.f32 0.0, %v17_v1  ;;  %v27_v4 = vadd.f32 1.837877, %v17_v1 }
   0x4   :  { %59 = vset.pattern.permute.xlu0 %v87_v2  ;;  %60 = vset.pattern.permute.xlu1 %v87_v2  ;;  %v15_v8 = vld [vmem:[%s130_s0] sm:$0xff]  ;;  %s88_s1 = smov [#allocation2]  }
   0x5   :  { %23 = vperm.xlu0 %59, %v16_v0   ;;  %v19_v5 = vmul.f32 1.442695, %v18_v3  ;;  %37 = vperm.xlu1 %60, %v27_v4   ;;  %s49_s2 = sshll.u32 %s88_s1, 4  ;;  %s50_s2 = int_to_ptr.vmem [resolvable:$true] %s49_s2 }
   0x6   :  { %s63_s18 = scalar_lea.vmem %s50_s2, 128  ;;  %p68_p1 = scmp.lt.s32.totalorder %s50_s2, %s50_s2 }
   0x7   :  { %61 = vpow2.f32 %v19_v5  ;;  %p64_p0 = scmp.ne.s32.totalorder %s50_s2, %s63_s18  ;;  %p69_p2 = scmp.lt.s32.totalorder %s63_s18, %s63_s18 }
   0x9   :  { %p70_p3 = por %p69_p2, %p68_p1 }
   0xb   :  { %p71_p4 = pnand %p70_p3, %p64_p0 }
  0x11   :  { %v62_v6 = vpop.eup %61 }
  0x12   :  { %31 = vperm.xlu0 %59, %v62_v6  }
  0x84   :  { %v24_v7 = vpop.permute.xlu0 %23  ;;  %v38_v12 = vpop.permute.xlu1 %37 }
  0x85   :  { %v26_v9 = vsub.f32 %v15_v8, %v24_v7 }
  0x87   :  { %v28_v10 = vmul.f32 %v26_v9, %v26_v9 }
  0x91   :  { %v32_v11 = vpop.permute.xlu0 %31 }
  0x92   :  { %v34_v13 = vmul.f32 %v32_v11, %v28_v10 }
  0x94   :  { %v40_v14 = vadd.f32 %v38_v12, %v34_v13 }
  0x96   :  { %v41_v15 = vmul.f32 -0.5, %v40_v14 }
  0x98   :  { %42 = vst [vmem:[#allocation2] sm:$0xff] %v41_v15 }
  0x99   :  { %74 = shalt.err (!%p71_p4)
}
  0x9a   :  { %s75_s20 = scalar_lea.hbm %s133_s3, 128 }
  0x9b   :  { %p76_p5 = scmp.ne.s32.totalorder %s133_s3, %s75_s20  ;;  %p79_p6 = scmp.lt.u32.totalorder %s75_s20, %s133_s3 }
  0x9d   :  { %p81_p7 = pnand %p79_p6, %p76_p5 }
  0x9f   :  { %84 = shalt.err (!%p81_p7)
}
  0xa0   :  { %52 = dma.vmem_to_hbm [thread:$0]  %s50_s2, 128, %s133_s3, [#allocation3]  }
  0xa1   :  { %85 = dma.done.wait [#allocation3], 128  }
  0xa2   :  { %86 = vsyncadd [#allocation3], 4294967168 }
  0xa3   :  { %56 = vsyncpa [#allocation3], 1 }

</bundles_post_ra>
